<compile_context>
chip_gen: v7x
topology: tpu7x:2x2x1
jax: 0.10.0
libtpu: 0.0.40
codegen_flags: <defaults>
</compile_context>

<pallas_src>
import functools
import math

import jax
import jax.numpy as jnp
from jax.experimental import pallas as pl
from jax.experimental.pallas import tpu as pltpu


def make_positional_encoding(seq_len: int, d_model: int) -> jax.Array:
    """Precompute the (seq_len, d_model) sin/cos table (== torch register_buffer)."""
    position = jnp.arange(seq_len, dtype=jnp.float32)[:, None]              # (S, 1)
    div_term = jnp.exp(jnp.arange(0, d_model, 2, dtype=jnp.float32)
                       * (-math.log(10000.0) / d_model))                    # (D/2,)
    angles = position * div_term                                            # (S, D/2)
    pe = jnp.zeros((seq_len, d_model), jnp.float32)
    pe = pe.at[:, 0::2].set(jnp.sin(angles))
    pe = pe.at[:, 1::2].set(jnp.cos(angles))
    return pe


def _pe_add_kernel(x_ref, pe_ref, o_ref):
    # Eval mode (dropout identity): y = x + pe.
    # x_ref/o_ref: (B, L), pe_ref: (1, L) -> broadcast over batch.
    o_ref[...] = x_ref[...] + pe_ref[...]


def _pe_add_dropout_kernel(seed_ref, x_ref, pe_ref, o_ref, *, threshold, scale):
    # Training mode: y = dropout(x + pe), fused, using the on-chip PRNG.
    # Distinct PRNG stream per grid tile.
    pltpu.prng_seed(seed_ref[0] + pl.program_id(0))

    y = x_ref[...] + pe_ref[...]

    # keep with prob (1 - p): compare raw uint32 bits against an integer
    # threshold (no float-in-[0,1) construction -> fewer VALU ops).
    bits = pltpu.bitcast(pltpu.prng_random_bits(y.shape), jnp.uint32)
    keep = bits >= jnp.uint32(threshold)
    o_ref[...] = jnp.where(keep, y * jnp.float32(scale), jnp.zeros_like(y))


def _choose_tile(total_l: int, batch: int,
                 budget_bytes: int = 20 * 1024 * 1024) -> int:
    """Largest lane-dense tile length L (multiple of 128 dividing total_l, or
    the full total_l) whose double-buffered f32 working set
        x(B,L) x2 + out(B,L) x2 + pe(1,L) x2
    fits the budget.  Budget is chosen so the working set stays well inside
    the explicit 32 MiB vmem_limit on every generation (v5e/v6e/v7x)."""
    per_elem = (4 * batch + 2) * 4
    cap = budget_bytes // per_elem
    if total_l <= cap:
        return total_l                      # whole thing in one block
    start = (cap // 128) * 128
    for l in range(start, 0, -128):
        if total_l % l == 0:
            return l
    return total_l                          # no aligned divisor fits (rare)


def positional_encoding_forward(x, pe, *, dropout_p=0.0, training=False, seed=0):
    """y = dropout(x + pe[:seq])  — equivalent to PositionalEncoding.forward."""
    batch, seq, d_model = x.shape
    seq_len, d_model_pe = pe.shape
    assert seq_len >= seq and d_model_pe == d_model
    assert 0.0 <= dropout_p < 1.0

    total_l = seq * d_model
    pe_total = seq_len * d_model

    # Lane-dense layout plumbing (contiguous reshapes, no data movement):
    # blocks get a last dim that is a large multiple of 128 even if d_model<128.
    x2 = x.reshape(batch, total_l)

    L = _choose_tile(total_l, batch)
    n_tiles = total_l // L
    grid = (n_tiles,)

    if L % 128 == 0 or L == pe_total:
        # Pass the FULL pe buffer; the BlockSpec only touches the first
        # seq*d_model elements (no wrapper-side slice/copy).
        pe2 = pe.reshape(1, pe_total)
    else:
        # Rare fallback (total_l not 128-aligned): slice so block == full dim.
        pe2 = pe[:seq].reshape(1, total_l)

    # Whole batch per tile -> each pe tile is DMA'd exactly once (pe traffic
    # = S*D, not B*S*D).  `*_` absorbs the optional scalar-prefetch ref.
    x_spec = pl.BlockSpec((batch, L), lambda j, *_: (0, j))
    pe_spec = pl.BlockSpec((1, L), lambda j, *_: (0, j))
    o_spec = pl.BlockSpec((batch, L), lambda j, *_: (0, j))

    cost = pl.CostEstimate(
        flops=batch * total_l,
        transcendentals=0,
        bytes_accessed=4 * (2 * batch * total_l + total_l),
    )
    cparams = pltpu.CompilerParams(
        dimension_semantics=("parallel",),
        vmem_limit_bytes=32 * 1024 * 1024,   # >= scoped default on all gens,
    )                                        # <= 64 MiB physical on v7x
    out_shape = jax.ShapeDtypeStruct((batch, total_l), x.dtype)

    if training and dropout_p > 0.0:
        threshold = min(int(round(dropout_p * 2.0 ** 32)), 2 ** 32 - 1)
        kernel = functools.partial(_pe_add_dropout_kernel,
                                   threshold=threshold,
                                   scale=1.0 / (1.0 - dropout_p))
        grid_spec = pltpu.PrefetchScalarGridSpec(
            num_scalar_prefetch=1, grid=grid,
            in_specs=[x_spec, pe_spec], out_specs=o_spec)
        seed_arr = jnp.asarray([seed], dtype=jnp.int32)
        y2 = pl.pallas_call(
            kernel, out_shape=out_shape, grid_spec=grid_spec,
            compiler_params=cparams, cost_estimate=cost,
        )(seed_arr, x2, pe2)
    else:
        grid_spec = pltpu.PrefetchScalarGridSpec(
            num_scalar_prefetch=0, grid=grid,
            in_specs=[x_spec, pe_spec], out_specs=o_spec)
        y2 = pl.pallas_call(
            _pe_add_kernel, out_shape=out_shape, grid_spec=grid_spec,
            compiler_params=cparams, cost_estimate=cost,
        )(x2, pe2)

    return y2.reshape(batch, seq, d_model)


if __name__ == "__main__":
    batch, seq, d_model = 2, 8, 64
    seq_len_buffer = 16                       # module's seq_len >= runtime seq
    dropout_p = 0.1

    key = jax.random.PRNGKey(0)
    x = jax.random.normal(key, (batch, seq, d_model), jnp.float32)
    pe = make_positional_encoding(seq_len_buffer, d_model)

    # --- eval mode (dropout inactive): exact check against pure-JAX reference.
    y = positional_encoding_forward(x, pe, dropout_p=dropout_p, training=False)
    y = jax.block_until_ready(y)
    y_ref = x + pe[None, :seq, :]
    assert y.shape == (batch, seq, d_model)
    assert jnp.allclose(y, y_ref, atol=1e-6, rtol=1e-6)

    # --- training mode uses the TPU hardware PRNG (pltpu.prng_seed /
    #     prng_random_bits), which only lowers on a real TPU backend; skip it
    #     when the default backend is not a TPU (e.g. CPU interpret sandbox).
    if jax.default_backend() == "tpu":
        y_tr = positional_encoding_forward(x, pe, dropout_p=dropout_p,
                                           training=True, seed=1234)
        y_tr = jax.block_until_ready(y_tr)
        scaled = y_ref / (1.0 - dropout_p)
        ok = (jnp.isclose(y_tr, 0.0, atol=1e-6)
              | jnp.isclose(y_tr, scaled, atol=1e-5, rtol=1e-5))
        assert bool(jnp.all(ok))

    print("KERNEL_OK")
</pallas_src>

<mosaic_0001>
module attributes {stable_mosaic.version = 11 : i64} {
  func.func @_pe_add_kernel(%arg0: i32, %arg1: memref<2x512xf32, #tpu.memory_space<vmem>>, %arg2: memref<1x512xf32, #tpu.memory_space<vmem>>, %arg3: memref<2x512xf32, #tpu.memory_space<vmem>>) attributes {dimension_semantics = [#tpu.dimension_semantics<parallel>], iteration_bounds = array<i64: 1>, scalar_prefetch = 0 : i64, scratch_operands = 0 : i64, tpu.core_type = #tpu.core_type<tc>, window_params = [{transform_indices = @transform_0, window_bounds = array<i64: 2, 512>}, {transform_indices = @transform_1, window_bounds = array<i64: 1, 512>}, {transform_indices = @transform_2, window_bounds = array<i64: 2, 512>}]} {
    %c0 = arith.constant 0 : index
    %c0_0 = arith.constant 0 : index
    %0 = vector.load %arg1[%c0, %c0_0] : memref<2x512xf32, #tpu.memory_space<vmem>>, vector<2x512xf32>
    %c0_1 = arith.constant 0 : index
    %c0_2 = arith.constant 0 : index
    %1 = vector.load %arg2[%c0_1, %c0_2] : memref<1x512xf32, #tpu.memory_space<vmem>>, vector<1x512xf32>
    %2 = vector.broadcast %1 : vector<1x512xf32> to vector<2x512xf32>
    %3 = arith.addf %0, %2 : vector<2x512xf32>
    %c0_3 = arith.constant 0 : index
    %c0_4 = arith.constant 0 : index
    %4 = vector.load %arg3[%c0_3, %c0_4] : memref<2x512xf32, #tpu.memory_space<vmem>>, vector<2x512xf32>
    tpu.vector_store %arg3[%c0_3, %c0_4], %3 {strides = array<i32>} : memref<2x512xf32, #tpu.memory_space<vmem>>, vector<2x512xf32>,
    return
  }
  func.func @transform_0(%arg0: i32) -> (i32, i32) {
    %c0_i32 = arith.constant 0 : i32
    %c0_i32_0 = arith.constant 0 : i32
    return %c0_i32, %arg0 : i32, i32
  }
  func.func @transform_1(%arg0: i32) -> (i32, i32) {
    %c0_i32 = arith.constant 0 : i32
    %c0_i32_0 = arith.constant 0 : i32
    return %c0_i32, %arg0 : i32, i32
  }
  func.func @transform_2(%arg0: i32) -> (i32, i32) {
    %c0_i32 = arith.constant 0 : i32
    %c0_i32_0 = arith.constant 0 : i32
    return %c0_i32, %arg0 : i32, i32
  }
}

</mosaic_0001>

<bundles_post_ra>
// kernel: tpu_custom_call.1
= control target key start
LH: loop header
LB: loop body
LE: loop exit
PB: predicated region body
PF: predicated region fallthrough
CT: control target
= control target key end

     0   :  { %7 = vsyncpa [#allocation3], 0  ;;  %s232_s0 = inlined_call_operand.hbm [shape: f32[2,512], index: 0, kind: input, shape index: {}]   ;;  %s233_s1 = inlined_call_operand.hbm [shape: f32[1,1024], index: 1, kind: input, shape index: {}]   ;;  %s234_s2 = inlined_call_operand.hbm [shape: f32[2,512], index: 2, kind: output, shape index: {}]  }
   0x1   :  { %8 = vsyncpa [#allocation6], 0 }
   0x2   :  { %9 = vsyncpa [#allocation4], 0  ;;  %s167_s9 = smov [#allocation2]   ;;  %s168_s11 = smov [#allocation5]  }
   0x3   :  { %s16_s10 = sshll.u32 %s167_s9, 4  ;;  %s26_s12 = sshll.u32 %s168_s11, 4  ;;  %s17_s10 = int_to_ptr.vmem [resolvable:$true] %s16_s10  ;;  %s186_s12 = int_to_ptr.vmem [resolvable:$true] %s26_s12 }
   0x4   :  { %s95_s15 = scalar_lea.hbm %s232_s0, 128 }
   0x5   :  { %p96_p0 = scmp.ne.s32.totalorder %s232_s0, %s95_s15  ;;  %p99_p1 = scmp.lt.u32.totalorder %s95_s15, %s232_s0 }
   0x7   :  { %p101_p2 = pnand %p99_p1, %p96_p0 }
   0x9   :  { %104 = shalt.err (!%p101_p2)
}
   0xa   :  { %s105_s20 = scalar_lea.vmem %s17_s10, 128  ;;  %p110_p4 = scmp.lt.s32.totalorder %s17_s10, %s17_s10 }
   0xb   :  { %p106_p3 = scmp.ne.s32.totalorder %s17_s10, %s105_s20  ;;  %p111_p5 = scmp.lt.s32.totalorder %s105_s20, %s105_s20 }
   0xd   :  { %p112_p6 = por %p111_p5, %p110_p4 }
   0xf   :  { %p113_p7 = pnand %p112_p6, %p106_p3 }
  0x11   :  { %116 = shalt.err (!%p113_p7)
}
  0x12   :  { %19 = dma.hbm_to_vmem [thread:$0]  %s232_s0, 128, %s17_s10, [#allocation3]  }
  0x13   :  { %s117_s25 = scalar_lea.hbm %s233_s1, 64  ;;  %s119_s30 = scalar_lea.hbm %s233_s1, 128 }
  0x14   :  { %p118_p8 = scmp.ne.s32.totalorder %s233_s1, %s117_s25  ;;  %p120_p9 = scmp.lt.u32.totalorder %s119_s30, %s117_s25 }
  0x15   :  { %p121_p10 = scmp.lt.u32.totalorder %s117_s25, %s233_s1 }
  0x17   :  { %p122_p11 = por %p121_p10, %p120_p9 }
  0x19   :  { %p123_p12 = pnand %p122_p11, %p118_p8 }
  0x1b   :  { %126 = shalt.err (!%p123_p12)
}
  0x1c   :  { %s127_s0 = scalar_lea.vmem %s186_s12, 64  ;;  %p132_p0 = scmp.lt.s32.totalorder %s186_s12, %s186_s12 }
  0x1d   :  { %p128_p13 = scmp.ne.s32.totalorder %s186_s12, %s127_s0  ;;  %p133_p1 = scmp.lt.s32.totalorder %s127_s0, %s127_s0 }
  0x1f   :  { %p134_p2 = por %p133_p1, %p132_p0 }
  0x21   :  { %p135_p3 = pnand %p134_p2, %p128_p13 }
  0x23   :  { %138 = shalt.err (!%p135_p3)
}
  0x24   :  { %29 = dma.hbm_to_vmem [thread:$0]  %s233_s1, 64, %s186_s12, [#allocation6]  }
  0x25   :  { %161 = dma.done.wait [#allocation3], 128  }
  0x26   :  { %162 = vsyncadd [#allocation3], 4294967168 }
  0x27   :  { %163 = dma.done.wait [#allocation6], 64  }
  0x28   :  { %164 = vsyncadd [#allocation6], 4294967232  ;;  %v39_v0 = vlaneseq  ;;  %v169_v1 = vmov 1983009808   ;;  %v37_v9 = vld [vmem:[#allocation5] sm:$0xf] }
  0x29   :  { %v58_v2 = vunpack.c.l.s4 %v169_v1  ;;  %v36_v19 = vld [vmem:[#allocation2] sm:$0xff]  ;;  %s170_s1 = smov [#allocation7]  }
  0x2a   :  { %v40_v3 = vshrl.u32 %v39_v0, 7  ;;  %s81_s7 = sshll.u32 %s170_s1, 4  ;;  %s82_s7 = int_to_ptr.vmem [resolvable:$true] %s81_s7 }
  0x2b   :  { %v59_v4 = vunpack.c.0.s8 %v58_v2  ;;  %s139_s8 = scalar_lea.vmem %s82_s7, 128  ;;  %p144_p5 = scmp.lt.s32.totalorder %s82_s7, %s82_s7 }
  0x2c   :  { %v41_v5 = vsub.s32 0, %v40_v3  ;;  %v45_v6 = vsub.s32 1, %v40_v3  ;;  %v49_v7 = vsub.s32 2, %v40_v3  ;;  %v53_v8 = vsub.s32 3, %v40_v3  ;;  %p140_p4 = scmp.ne.s32.totalorder %s82_s7, %s139_s8  ;;  %p145_p6 = scmp.lt.s32.totalorder %s139_s8, %s139_s8 }
  0x2d   :  { %v62_v10 = vsub.s32 %v59_v4, %v40_v3 }
  0x2e   :  { %v42_v11 = vrot.slane %v37_v9, %v41_v5  ;;  %v46_v12 = vrot.slane %v37_v9, %v45_v6  ;;  %v50_v13 = vrot.slane %v37_v9, %v49_v7  ;;  %v54_v14 = vrot.slane %v37_v9, %v53_v8  ;;  %p146_p7 = por %p145_p6, %p144_p5 }
  0x30   :  { %v55_v15 = vcombine.low %v42_v11, %v46_v12  ;;  %v56_v16 = vcombine.low %v50_v13, %v54_v14  ;;  %p147_p8 = pnand %p146_p7, %p140_p4 }
  0x32   :  { %v63_v17 = vrot.slane %v55_v15, %v62_v10  ;;  %v70_v18 = vrot.slane %v56_v16, %v62_v10 }
  0x34   :  { %v71_v20 = vcombine.low %v63_v17, %v70_v18 }
  0x36   :  { %v73_v21 = vadd.f32 %v71_v20, %v36_v19 }
  0x38   :  { %74 = vst [vmem:[#allocation7] sm:$0xff] %v73_v21 }
  0x39   :  { %150 = shalt.err (!%p147_p8)
}
  0x3a   :  { %s151_s11 = scalar_lea.hbm %s234_s2, 128 }
  0x3b   :  { %p152_p9 = scmp.ne.s32.totalorder %s234_s2, %s151_s11  ;;  %p155_p10 = scmp.lt.u32.totalorder %s151_s11, %s234_s2 }
  0x3d   :  { %p157_p11 = pnand %p155_p10, %p152_p9 }
  0x3f   :  { %160 = shalt.err (!%p157_p11)
}
  0x40   :  { %84 = dma.vmem_to_hbm [thread:$0]  %s82_s7, 128, %s234_s2, [#allocation4]  }
  0x41   :  { %165 = dma.done.wait [#allocation4], 128  }
  0x42   :  { %166 = vsyncadd [#allocation4], 4294967168 }
  0x43   :  { %88 = vsyncpa [#allocation3], 1 }
  0x44   :  { %89 = vsyncpa [#allocation6], 1 }
  0x45   :  { %90 = vsyncpa [#allocation4], 1 }

</bundles_post_ra>
